<compile_context>
chip_gen: v7x
topology: tpu7x:2x2x1
jax: 0.10.0
libtpu: 0.0.40
codegen_flags: <defaults>
</compile_context>

<pallas_src>
import functools

import jax
import jax.numpy as jnp
from jax.experimental import pallas as pl
from jax.experimental.pallas import tpu as pltpu

HIDDEN = 128

_LANE = 128
_SUBLANE = 8
# Per-grid-step VMEM budget for one buffer set (x tile + lane-padded out tile).
# Double buffering => ~2x this resident; ~17 MiB total worst case.
_TILE_BUDGET_BYTES = 8 * 1024 * 1024


def _round_up(n, m):
    return ((n + m - 1) // m) * m


def _pick_pack(batch, d_in):
    """Largest pack factor P with P | batch and packed rows of <= 1024 lanes."""
    for p in (32, 16, 8, 4, 2):
        if batch % p == 0 and d_in * p <= 1024:
            return p
    return 1


def _pick_block_rows(n_rows, packed_d):
    """Packed-x rows per grid step, sized to ~_TILE_BUDGET_BYTES per buffer set."""
    padded_d = _round_up(max(packed_d, _LANE), _LANE)          # VMEM lane padding of x
    bytes_per_row = (padded_d + _LANE) * 4                     # x row + lane-padded out row (f32)
    rows = _TILE_BUDGET_BYTES // bytes_per_row
    rows = max(_SUBLANE, (rows // _SUBLANE) * _SUBLANE)
    if n_rows <= rows:
        return n_rows                                          # single full-array block
    return rows


def _regression_kernel_packed(x_ref, w_ref, b_ref, o_ref):
    # x_ref: (block_rows, L)  packed batch tile (P batch rows per VMEM row)
    # w_ref: (L, P)           block-diagonal folded weight (resident)
    # b_ref: (1, 1)           folded bias scalar in SMEM
    # o_ref: (block_rows, P)  row-major == original (block_rows*P, 1) order
    y = jnp.dot(x_ref[...], w_ref[...], preferred_element_type=jnp.float32)
    o_ref[...] = (y + b_ref[0, 0]).astype(o_ref.dtype)


def _regression_kernel_rowsum(x_ref, w_ref, b_ref, o_ref):
    # Fallback (pack factor 1): VPU multiply + XLU lane reduce, exact f32.
    y = jnp.sum(x_ref[...] * w_ref[...], axis=-1, keepdims=True)
    o_ref[...] = (y + b_ref[0, 0]).astype(o_ref.dtype)


@functools.partial(jax.jit, static_argnames=("block_rows",))
def regression_forward(x, w1, b1, w2, b2, *, block_rows=None):
    """Forward of Regression:  (x @ w1 + b1) @ w2 + b2.

    x: (B, D_in); w1: (D_in, 128); b1: (1, 128); w2: (128, 1); b2: (1, 1).
    Weights are pre-transposed relative to nn.Linear (plain [B,D]x[D,H] matmuls).
    """
    B, D_in = x.shape
    out_dtype = x.dtype

    # --- exact affine composition of the two Linear layers (tiny, done in XLA)
    w_col = jnp.matmul(w1, w2).astype(jnp.float32)                       # (D_in, 1)
    b_eff = (jnp.matmul(b1, w2) + b2).reshape(1, 1).astype(jnp.float32)  # (1, 1)

    # --- lane packing: P batch rows share one row of L = P*D_in lanes
    P = _pick_pack(B, D_in)
    L = P * D_in
    R = B // P
    x2 = x.reshape(R, L)        # free row-major collapse; P always divides B

    if P == 1:
        kernel = _regression_kernel_rowsum
        w_op = w_col.reshape(1, D_in)                                   # broadcast row
        w_spec = pl.BlockSpec((1, D_in), lambda i: (0, 0))
    else:
        kernel = _regression_kernel_packed
        # Block-diagonal weight: out[r, c] = sum_d x2[r, c*D_in + d] * w[d]
        w_op = jnp.kron(jnp.eye(P, dtype=jnp.float32), w_col)           # (L, P)
        w_spec = pl.BlockSpec((L, P), lambda i: (0, 0))

    # --- batch tiling: MiB-scale steps; single step for small batches
    if block_rows is None:
        block_rows = _pick_block_rows(R, L)
    block_rows = min(int(block_rows), R)
    if block_rows < R:
        block_rows = max(_SUBLANE, (block_rows // _SUBLANE) * _SUBLANE)

    grid = (pl.cdiv(R, block_rows),)    # partial final block handled by Pallas

    out = pl.pallas_call(
        kernel,
        out_shape=jax.ShapeDtypeStruct((R, P), out_dtype),
        grid_spec=pltpu.PrefetchScalarGridSpec(
            num_scalar_prefetch=0,
            grid=grid,
            in_specs=[
                pl.BlockSpec((block_rows, L), lambda i: (i, 0)),        # streamed x tile
                w_spec,                                                 # resident folded weight
                pl.BlockSpec(memory_space=pltpu.MemorySpace.SMEM),      # folded bias scalar
            ],
            out_specs=pl.BlockSpec((block_rows, P), lambda i: (i, 0)),
        ),
        compiler_params=pltpu.CompilerParams(
            dimension_semantics=("parallel",),
            vmem_limit_bytes=32 * 1024 * 1024,
        ),
    )(x2, w_op, b_eff)

    return out.reshape(B, 1)    # free row-major collapse back to (B, 1)


def init_params(key, d_in):
    """Deterministic synthetic init mimicking nn.Linear's uniform(-1/sqrt(fan_in), ...)."""
    k1, k2, k3, k4 = jax.random.split(key, 4)
    lim1 = 1.0 / jnp.sqrt(jnp.float32(d_in))
    lim2 = 1.0 / jnp.sqrt(jnp.float32(HIDDEN))
    w1 = jax.random.uniform(k1, (d_in, HIDDEN), jnp.float32, -lim1, lim1)
    b1 = jax.random.uniform(k2, (1, HIDDEN), jnp.float32, -lim1, lim1)
    w2 = jax.random.uniform(k3, (HIDDEN, 1), jnp.float32, -lim2, lim2)
    b2 = jax.random.uniform(k4, (1, 1), jnp.float32, -lim2, lim2)
    return w1, b1, w2, b2


if __name__ == "__main__":
    key = jax.random.PRNGKey(0)
    kx, kp = jax.random.split(key)

    # Shapes consistent with the module: batch=64, input features=32.
    B, D_in = 64, 32
    x = jax.random.normal(kx, (B, D_in), jnp.float32)
    w1, b1, w2, b2 = init_params(kp, D_in)

    def ref_fn(xv):
        return (xv @ w1 + b1) @ w2 + b2

    # Tolerance covers the (exact-algebra) layer fold and MXU f32 pass rounding
    # vs. the two-matmul reference; real indexing bugs would blow far past it.
    ATOL = RTOL = 5e-3

    # 1) Packed path (P=32), single grid step.
    out = jax.block_until_ready(regression_forward(x, w1, b1, w2, b2))
    assert out.shape == (B, 1), out.shape
    assert jnp.allclose(out, ref_fn(x), atol=ATOL, rtol=RTOL), "mismatch vs reference"

    # 2) Ragged batch (B=50 -> pack factor 2, no pad copy).
    xr = jax.random.normal(kx, (50, D_in), jnp.float32)
    outr = jax.block_until_ready(regression_forward(xr, w1, b1, w2, b2))
    assert outr.shape == (50, 1), outr.shape
    assert jnp.allclose(outr, ref_fn(xr), atol=ATOL, rtol=RTOL), "ragged mismatch"

    # 3) Odd batch (B=37 -> unpacked fallback path).
    xo = jax.random.normal(kx, (37, D_in), jnp.float32)
    outo = jax.block_until_ready(regression_forward(xo, w1, b1, w2, b2))
    assert outo.shape == (37, 1), outo.shape
    assert jnp.allclose(outo, ref_fn(xo), atol=ATOL, rtol=RTOL), "odd-batch mismatch"

    # 4) Multi-step grid with a clipped partial final block (small tile override).
    xm = jax.random.normal(kx, (200, D_in), jnp.float32)
    outm = jax.block_until_ready(regression_forward(xm, w1, b1, w2, b2, block_rows=8))
    assert outm.shape == (200, 1), outm.shape
    assert jnp.allclose(outm, ref_fn(xm), atol=ATOL, rtol=RTOL), "multi-step mismatch"

    print("KERNEL_OK")
</pallas_src>

<mosaic_0001>
module attributes {stable_mosaic.version = 11 : i64} {
  func.func @_regression_kernel_packed(%arg0: i32, %arg1: memref<2x1024xf32, #tpu.memory_space<vmem>>, %arg2: memref<1024x32xf32, #tpu.memory_space<vmem>>, %arg3: memref<1x1xf32, #tpu.memory_space<smem>>, %arg4: memref<2x32xf32, #tpu.memory_space<vmem>>) attributes {dimension_semantics = [#tpu.dimension_semantics<parallel>], iteration_bounds = array<i64: 1>, scalar_prefetch = 0 : i64, scratch_operands = 0 : i64, tpu.core_type = #tpu.core_type<tc>, window_params = [{transform_indices = @transform_0, window_bounds = array<i64: 2, 1024>}, {pipeline_mode = #tpu.pipeline_mode<synchronous>, transform_indices = @transform_1, window_bounds = array<i64: 1024, 32>}, {transform_indices = @transform_2, window_bounds = array<i64: 1, 1>}, {transform_indices = @transform_3, window_bounds = array<i64: 2, 32>}]} {
    %c0 = arith.constant 0 : index
    %c0_0 = arith.constant 0 : index
    %0 = vector.load %arg1[%c0, %c0_0] : memref<2x1024xf32, #tpu.memory_space<vmem>>, vector<2x1024xf32>
    %c0_1 = arith.constant 0 : index
    %c0_2 = arith.constant 0 : index
    %1 = vector.load %arg2[%c0_1, %c0_2] : memref<1024x32xf32, #tpu.memory_space<vmem>>, vector<1024x32xf32>
    %cst = arith.constant dense<0.000000e+00> : vector<2x32xf32>
    %2 = tpu.matmul %0, %1, %cst {dimension_numbers = #tpu.dot_dimension_numbers<[1], [0], [0], [1], [0, 0, 1, 1], [], []>} : vector<2x1024xf32>, vector<1024x32xf32>, vector<2x32xf32> -> vector<2x32xf32>
    %c0_3 = arith.constant 0 : index
    %c0_4 = arith.constant 0 : index
    %3 = memref.load %arg3[%c0_3, %c0_4] : memref<1x1xf32, #tpu.memory_space<smem>>
    %4 = vector.broadcast %3 : f32 to vector<2x32xf32>
    %5 = arith.addf %2, %4 : vector<2x32xf32>
    %c0_5 = arith.constant 0 : index
    %c0_6 = arith.constant 0 : index
    %6 = vector.load %arg4[%c0_5, %c0_6] : memref<2x32xf32, #tpu.memory_space<vmem>>, vector<2x32xf32>
    tpu.vector_store %arg4[%c0_5, %c0_6], %5 {strides = array<i32>} : memref<2x32xf32, #tpu.memory_space<vmem>>, vector<2x32xf32>,
    return
  }
  func.func @transform_0(%arg0: i32) -> (i32, i32) {
    %c0_i32 = arith.constant 0 : i32
    %c0_i32_0 = arith.constant 0 : i32
    return %arg0, %c0_i32 : i32, i32
  }
  func.func @transform_1(%arg0: i32) -> (i32, i32) {
    %c0_i32 = arith.constant 0 : i32
    %c0_i32_0 = arith.constant 0 : i32
    %c0_i32_1 = arith.constant 0 : i32
    return %c0_i32, %c0_i32_0 : i32, i32
  }
  func.func @transform_2(%arg0: i32) -> (i32, i32) {
    %c0_i32 = arith.constant 0 : i32
    %c0_i32_0 = arith.constant 0 : i32
    %c0_i32_1 = arith.constant 0 : i32
    return %c0_i32, %c0_i32_0 : i32, i32
  }
  func.func @transform_3(%arg0: i32) -> (i32, i32) {
    %c0_i32 = arith.constant 0 : i32
    %c0_i32_0 = arith.constant 0 : i32
    return %arg0, %c0_i32 : i32, i32
  }
}

</mosaic_0001>

<bundles_post_ra>
// kernel: regression_forward.1
= control target key start
LH: loop header
LB: loop body
LE: loop exit
PB: predicated region body
PF: predicated region fallthrough
CT: control target
= control target key end

     0   :  { %v748_v47 = vmov 1983009808   ;;  %v153_v49 = vlaneseq  ;;  %vm471_vm0 = vcmask 254976   ;;  %s1175_s1 = inlined_call_operand.vmem [shape: f32[1024,32], index: 1, kind: input, shape index: {}]   ;;  %s1176_s0 = inlined_call_operand.vmem [shape: f32[2,1024], index: 0, kind: input, shape index: {}]   ;;  %s1177_s2 = inlined_call_operand.<no memory space> [shape: f32[1,1], index: 2, kind: input, shape index: {}]   ;;  %s1178_s3 = inlined_call_operand.vmem [shape: f32[2,32], index: 3, kind: output, shape index: {}]  }
   0x1   :  { %v33_v0 = vld [vmem:[%s1175_s1 + $0x80] sm:$0xff]  ;;  %v34_v1 = vld [vmem:[%s1175_s1 + $0x88] sm:$0xff]  ;;  %v35_v11 = vld [vmem:[%s1175_s1 + $0x90] sm:$0xff]  ;;  %v151_v48 = vunpack.c.l.s4 %v748_v47 }
   0x2   :  { %v17_v2 = vld [vmem:[%s1175_s1] sm:$0xff]  ;;  %v617_v3 = vpack.c.bf16 %v34_v1, %v33_v0  ;;  %v18_v4 = vld [vmem:[%s1175_s1 + $0x8] sm:$0xff]  ;;  %v36_v13 = vld [vmem:[%s1175_s1 + $0x98] sm:$0xff]  ;;  %v154_v0 = vshrl.u32 %v153_v49, 7 }
   0x3   :  { %v65_v5 = vld [vmem:[%s1175_s1 + $0x180] sm:$0xff]  ;;  %v66_v6 = vld [vmem:[%s1175_s1 + $0x188] sm:$0xff]  ;;  %v619_v7 = vpack.c.bf16 %v18_v4, %v17_v2  ;;  %v19_v14 = vld [vmem:[%s1175_s1 + $0x10] sm:$0xff]  ;;  %v621_v16 = vpack.c.bf16 %v36_v13, %v35_v11  ;;  %v152_v63 = vunpack.c.0.s8 %v151_v48 }
   0x4   :  { %v649_v8 = vpack.c.bf16 %v66_v6, %v65_v5  ;;  %v49_v9 = vld [vmem:[%s1175_s1 + $0x100] sm:$0xff]  ;;  %v50_v10 = vld [vmem:[%s1175_s1 + $0x108] sm:$0xff]  ;;  %618 = vmatprep.subr.bf16.mxu0 %v617_v3  ;;  %v20_v15 = vld [vmem:[%s1175_s1 + $0x18] sm:$0xff] }
   0x5   :  { %v651_v12 = vpack.c.bf16 %v50_v10, %v49_v9  ;;  %620 = vmatpush3.bf16.msra.mxu0 %v619_v7  ;;  %v623_v17 = vpack.c.bf16 %v20_v15, %v19_v14  ;;  %v67_v18 = vld [vmem:[%s1175_s1 + $0x190] sm:$0xff]  ;;  %v68_v19 = vld [vmem:[%s1175_s1 + $0x198] sm:$0xff]  ;;  %v37_v23 = vld [vmem:[%s1175_s1 + $0xa0] sm:$0xff]  ;;  %v155_v13 = vsub.s32 %v152_v63, %v154_v0 }
   0x6   :  { %650 = vmatprep.subr.bf16.mxu1 %v649_v8  ;;  %v51_v20 = vld [vmem:[%s1175_s1 + $0x110] sm:$0xff]  ;;  %v653_v21 = vpack.c.bf16 %v68_v19, %v67_v18  ;;  %v52_v22 = vld [vmem:[%s1175_s1 + $0x118] sm:$0xff]  ;;  %v38_v24 = vld [vmem:[%s1175_s1 + $0xa8] sm:$0xff]  ;;  %622 = vmatprep.subr.bf16.mxu0 %v621_v16 }
   0x7   :  { %652 = vmatpush3.bf16.msra.mxu1 %v651_v12  ;;  %v655_v25 = vpack.c.bf16 %v52_v22, %v51_v20  ;;  %v625_v26 = vpack.c.bf16 %v38_v24, %v37_v23  ;;  %v21_v27 = vld [vmem:[%s1175_s1 + $0x20] sm:$0xff]  ;;  %v22_v28 = vld [vmem:[%s1175_s1 + $0x28] sm:$0xff]  ;;  %v39_v35 = vld [vmem:[%s1175_s1 + $0xb0] sm:$0xff] }
   0x8   :  { %v69_v29 = vld [vmem:[%s1175_s1 + $0x1a0] sm:$0xff]  ;;  %654 = vmatprep.subr.bf16.mxu1 %v653_v21  ;;  %v70_v30 = vld [vmem:[%s1175_s1 + $0x1a8] sm:$0xff]  ;;  %v627_v33 = vpack.c.bf16 %v22_v28, %v21_v27  ;;  %v40_v36 = vld [vmem:[%s1175_s1 + $0xb8] sm:$0xff] }
   0x9   :  { %v53_v31 = vld [vmem:[%s1175_s1 + $0x120] sm:$0xff]  ;;  %v54_v32 = vld [vmem:[%s1175_s1 + $0x128] sm:$0xff]  ;;  %624 = vmatpush3.bf16.msra.mxu0 %v623_v17  ;;  %v657_v34 = vpack.c.bf16 %v70_v30, %v69_v29  ;;  %v23_v37 = vld [vmem:[%s1175_s1 + $0x30] sm:$0xff]  ;;  %v629_v39 = vpack.c.bf16 %v40_v36, %v39_v35 }
   0xa   :  { %626 = vmatprep.subr.bf16.mxu0 %v625_v26  ;;  %v659_v38 = vpack.c.bf16 %v54_v32, %v53_v31  ;;  %v24_v40 = vld [vmem:[%s1175_s1 + $0x38] sm:$0xff]  ;;  %v71_v41 = vld [vmem:[%s1175_s1 + $0x1b0] sm:$0xff]  ;;  %v41_v46 = vld [vmem:[%s1175_s1 + $0xc0] sm:$0xff] }
   0xb   :  { %656 = vmatpush3.bf16.msra.mxu1 %v655_v25  ;;  %v72_v42 = vld [vmem:[%s1175_s1 + $0x1b8] sm:$0xff]  ;;  %v55_v44 = vld [vmem:[%s1175_s1 + $0x130] sm:$0xff]  ;;  %v42_v50 = vld [vmem:[%s1175_s1 + $0xc8] sm:$0xff]  ;;  %v631_v51 = vpack.c.bf16 %v24_v40, %v23_v37 }
   0xc   :  { %658 = vmatprep.subr.bf16.mxu1 %v657_v34  ;;  %v661_v43 = vpack.c.bf16 %v72_v42, %v71_v41  ;;  %v56_v45 = vld [vmem:[%s1175_s1 + $0x138] sm:$0xff]  ;;  %v73_v52 = vld [vmem:[%s1175_s1 + $0x1c0] sm:$0xff]  ;;  %v74_v53 = vld [vmem:[%s1175_s1 + $0x1c8] sm:$0xff]  ;;  %v633_v55 = vpack.c.bf16 %v42_v50, %v41_v46 }
   0xd   :  { %628 = vmatpush3.bf16.msra.mxu0 %v627_v33  ;;  %v663_v54 = vpack.c.bf16 %v56_v45, %v55_v44  ;;  %v25_v56 = vld [vmem:[%s1175_s1 + $0x40] sm:$0xff]  ;;  %v26_v57 = vld [vmem:[%s1175_s1 + $0x48] sm:$0xff]  ;;  %v665_v59 = vpack.c.bf16 %v74_v53, %v73_v52  ;;  %v43_v61 = vld [vmem:[%s1175_s1 + $0xd0] sm:$0xff] }
   0xe   :  { %630 = vmatprep.subr.bf16.mxu0 %v629_v39  ;;  %v57_v58 = vld [vmem:[%s1175_s1 + $0x140] sm:$0xff]  ;;  %v58_v60 = vld [vmem:[%s1175_s1 + $0x148] sm:$0xff]  ;;  %v44_v62 = vld [vmem:[%s1175_s1 + $0xd8] sm:$0xff]  ;;  %v635_v3 = vpack.c.bf16 %v26_v57, %v25_v56 }
   0xf   :  { %660 = vmatpush3.bf16.msra.mxu1 %v659_v38  ;;  %v75_v1 = vld [vmem:[%s1175_s1 + $0x1d0] sm:$0xff]  ;;  %v76_v2 = vld [vmem:[%s1175_s1 + $0x1d8] sm:$0xff]  ;;  %v667_v4 = vpack.c.bf16 %v58_v60, %v57_v58  ;;  %v637_v5 = vpack.c.bf16 %v44_v62, %v43_v61  ;;  %v45_v11 = vld [vmem:[%s1175_s1 + $0xe0] sm:$0xff] }
  0x10   :  { %662 = vmatprep.subr.bf16.mxu1 %v661_v43  ;;  %v27_v6 = vld [vmem:[%s1175_s1 + $0x50] sm:$0xff]  ;;  %v28_v7 = vld [vmem:[%s1175_s1 + $0x58] sm:$0xff]  ;;  %v669_v9 = vpack.c.bf16 %v76_v2, %v75_v1  ;;  %v46_v12 = vld [vmem:[%s1175_s1 + $0xe8] sm:$0xff] }
  0x11   :  { %632 = vmatpush3.bf16.msra.mxu0 %v631_v51  ;;  %v59_v8 = vld [vmem:[%s1175_s1 + $0x150] sm:$0xff]  ;;  %v60_v10 = vld [vmem:[%s1175_s1 + $0x158] sm:$0xff]  ;;  %v77_v14 = vld [vmem:[%s1175_s1 + $0x1e0] sm:$0xff]  ;;  %v639_v16 = vpack.c.bf16 %v28_v7, %v27_v6  ;;  %v641_v19 = vpack.c.bf16 %v46_v12, %v45_v11 }
  0x12   :  { %634 = vmatprep.subr.bf16.mxu0 %v633_v55  ;;  %v78_v15 = vld [vmem:[%s1175_s1 + $0x1e8] sm:$0xff]  ;;  %v29_v17 = vld [vmem:[%s1175_s1 + $0x60] sm:$0xff]  ;;  %v671_v18 = vpack.c.bf16 %v60_v10, %v59_v8  ;;  %v47_v25 = vld [vmem:[%s1175_s1 + $0xf0] sm:$0xff] }
  0x13   :  { %664 = vmatpush3.bf16.msra.mxu1 %v663_v54  ;;  %v30_v20 = vld [vmem:[%s1175_s1 + $0x68] sm:$0xff]  ;;  %v61_v21 = vld [vmem:[%s1175_s1 + $0x160] sm:$0xff]  ;;  %v673_v23 = vpack.c.bf16 %v78_v15, %v77_v14  ;;  %v48_v26 = vld [vmem:[%s1175_s1 + $0xf8] sm:$0xff] }
  0x14   :  { %666 = vmatprep.subr.bf16.mxu1 %v665_v59  ;;  %v15_v22 = vld [vmem:[%s1176_s0] sm:$0xff]  ;;  %v62_v24 = vld [vmem:[%s1175_s1 + $0x168] sm:$0xff]  ;;  %v79_v29 = vld [vmem:[%s1175_s1 + $0x1f0] sm:$0xff]  ;;  %v643_v31 = vpack.c.bf16 %v30_v20, %v29_v17  ;;  %v645_v36 = vpack.c.bf16 %v48_v26, %v47_v25 }
  0x15   :  { %636 = vmatpush3.bf16.msra.mxu0 %v635_v3  ;;  %v156_v27 = vrot.slane %v15_v22, %v155_v13  ;;  %v149_v28 = vcombine.high %v15_v22, %v15_v22  ;;  %v80_v30 = vld [vmem:[%s1175_s1 + $0x1f8] sm:$0xff]  ;;  %v16_v32 = vld [vmem:[%s1176_s0 + $0x8] sm:$0xff]  ;;  %v675_v35 = vpack.c.bf16 %v62_v24, %v61_v21  ;;  %v31_v37 = vld [vmem:[%s1175_s1 + $0x70] sm:$0xff] }
  0x16   :  { %638 = vmatprep.subr.bf16.mxu0 %v637_v5  ;;  %v32_v38 = vld [vmem:[%s1175_s1 + $0x78] sm:$0xff]  ;;  %v63_v39 = vld [vmem:[%s1175_s1 + $0x170] sm:$0xff]  ;;  %v677_v40 = vpack.c.bf16 %v80_v30, %v79_v29  ;;  %v97_v42 = vld [vmem:[%s1175_s1 + $0x280] sm:$0xff]  ;;  %v166_v45 = vcombine.high %v16_v32, %v16_v32  ;;  %v997_v58 = vrot.slane %v16_v32, %v155_v13 }
  0x17   :  { %668 = vmatpush3.bf16.msra.mxu1 %v667_v4  ;;  %v164_v33 = vcombine.high %v156_v27, %v156_v27  ;;  %v163_v34 = vrot.slane %v149_v28, %v155_v13  ;;  %v64_v41 = vld [vmem:[%s1175_s1 + $0x178] sm:$0xff]  ;;  %v98_v43 = vld [vmem:[%s1175_s1 + $0x288] sm:$0xff]  ;;  %v129_v46 = vld [vmem:[%s1175_s1 + $0x380] sm:$0xff]  ;;  %v647_v48 = vpack.c.bf16 %v32_v38, %v31_v37 }
  0x18   :  { %670 = vmatprep.subr.bf16.mxu1 %v669_v9  ;;  %v130_v47 = vld [vmem:[%s1175_s1 + $0x388] sm:$0xff]  ;;  %v679_v49 = vpack.c.bf16 %v64_v41, %v63_v39  ;;  %v681_v50 = vpack.c.bf16 %v98_v43, %v97_v42  ;;  %v81_v51 = vld [vmem:[%s1175_s1 + $0x200] sm:$0xff]  ;;  %v99_v56 = vld [vmem:[%s1175_s1 + $0x290] sm:$0xff]  ;;  %v1005_v61 = vrot.slane %v166_v45, %v155_v13  ;;  %v181_v8 = vcombine.high %v997_v58, %v997_v58 }
  0x19   :  { %640 = vmatpush3.bf16.msra.mxu0 %v639_v16  ;;  %255 = vmatprep.mubr.f32.mxu0 %v164_v33  ;;  %v165_v44 = vcombine.high %v163_v34, %v163_v34  ;;  %v82_v52 = vld [vmem:[%s1175_s1 + $0x208] sm:$0xff]  ;;  %v113_v53 = vld [vmem:[%s1175_s1 + $0x300] sm:$0xff]  ;;  %v713_v54 = vpack.c.bf16 %v130_v47, %v129_v46  ;;  %v100_v57 = vld [vmem:[%s1175_s1 + $0x298] sm:$0xff] }
  0x1a   :  { %642 = vmatprep.subr.bf16.mxu0 %v641_v19  ;;  %v114_v55 = vld [vmem:[%s1175_s1 + $0x308] sm:$0xff]  ;;  %v131_v59 = vld [vmem:[%s1175_s1 + $0x390] sm:$0xff]  ;;  %v132_v60 = vld [vmem:[%s1175_s1 + $0x398] sm:$0xff]  ;;  %v683_v62 = vpack.c.bf16 %v82_v52, %v81_v51  ;;  %v685_v0 = vpack.c.bf16 %v100_v57, %v99_v56  ;;  %v182_v11 = vcombine.high %v1005_v61, %v1005_v61 }
  0x1b   :  { %672 = vmatpush3.bf16.msra.mxu1 %v671_v18  ;;  %325 = vmatprep.mubr.f32.mxu1 %v165_v44  ;;  %v715_v63 = vpack.c.bf16 %v114_v55, %v113_v53  ;;  %v83_v1 = vld [vmem:[%s1175_s1 + $0x210] sm:$0xff]  ;;  %v84_v2 = vld [vmem:[%s1175_s1 + $0x218] sm:$0xff]  ;;  %v717_v4 = vpack.c.bf16 %v132_v60, %v131_v59  ;;  %v101_v6 = vld [vmem:[%s1175_s1 + $0x2a0] sm:$0xff] }
  0x1c   :  { %674 = vmatprep.subr.bf16.mxu1 %v673_v23  ;;  %v115_v3 = vld [vmem:[%s1175_s1 + $0x310] sm:$0xff]  ;;  %v116_v5 = vld [vmem:[%s1175_s1 + $0x318] sm:$0xff]  ;;  %v102_v7 = vld [vmem:[%s1175_s1 + $0x2a8] sm:$0xff]  ;;  %v687_v12 = vpack.c.bf16 %v84_v2, %v83_v1 }
  0x1d   :  { %644 = vmatpush3.bf16.msra.mxu0 %v643_v31  ;;  %v133_v9 = vld [vmem:[%s1175_s1 + $0x3a0] sm:$0xff]  ;;  %v134_v10 = vld [vmem:[%s1175_s1 + $0x3a8] sm:$0xff]  ;;  %v719_v13 = vpack.c.bf16 %v116_v5, %v115_v3  ;;  %v689_v14 = vpack.c.bf16 %v102_v7, %v101_v6  ;;  %v103_v20 = vld [vmem:[%s1175_s1 + $0x2b0] sm:$0xff] }
  0x1e   :  { %646 = vmatprep.subr.bf16.mxu0 %v645_v36  ;;  %v85_v15 = vld [vmem:[%s1175_s1 + $0x220] sm:$0xff]  ;;  %v86_v16 = vld [vmem:[%s1175_s1 + $0x228] sm:$0xff]  ;;  %v721_v18 = vpack.c.bf16 %v134_v10, %v133_v9  ;;  %v104_v21 = vld [vmem:[%s1175_s1 + $0x2b8] sm:$0xff] }
  0x1f   :  { %676 = vmatpush3.bf16.msra.mxu1 %v675_v35  ;;  %v117_v17 = vld [vmem:[%s1175_s1 + $0x320] sm:$0xff]  ;;  %v118_v19 = vld [vmem:[%s1175_s1 + $0x328] sm:$0xff]  ;;  %v135_v22 = vld [vmem:[%s1175_s1 + $0x3b0] sm:$0xff]  ;;  %v691_v24 = vpack.c.bf16 %v86_v16, %v85_v15  ;;  %v693_v26 = vpack.c.bf16 %v104_v21, %v103_v20  ;;  %v146_v21 = vstv %s1177_s2 }
  0x20   :  { %678 = vmatprep.subr.bf16.mxu1 %v677_v40  ;;  %v136_v23 = vld [vmem:[%s1175_s1 + $0x3b8] sm:$0xff]  ;;  %v723_v25 = vpack.c.bf16 %v118_v19, %v117_v17  ;;  %v119_v29 = vld [vmem:[%s1175_s1 + $0x330] sm:$0xff]  ;;  %v105_v32 = vld [vmem:[%s1175_s1 + $0x2c0] sm:$0xff] }
  0x21   :  { %648 = vmatpush3.bf16.msra.mxu0 %v647_v48  ;;  %v88_v28 = vld [vmem:[%s1175_s1 + $0x238] sm:$0xff]  ;;  %v725_v30 = vpack.c.bf16 %v136_v23, %v135_v22  ;;  %v106_v33 = vld [vmem:[%s1175_s1 + $0x2c8] sm:$0xff]  ;;  %v89_v39 = vld [vmem:[%s1175_s1 + $0x240] sm:$0xff] }
  0x22   :  { %682 = vmatprep.subr.bf16.mxu0 %v681_v50  ;;  %v120_v31 = vld [vmem:[%s1175_s1 + $0x338] sm:$0xff]  ;;  %v138_v35 = vld [vmem:[%s1175_s1 + $0x3c8] sm:$0xff]  ;;  %v697_v38 = vpack.c.bf16 %v106_v33, %v105_v32  ;;  %v121_v41 = vld [vmem:[%s1175_s1 + $0x340] sm:$0xff] }
  0x23   :  { %680 = vmatpush3.bf16.msra.mxu1 %v679_v49  ;;  %v727_v37 = vpack.c.bf16 %v120_v31, %v119_v29  ;;  %v90_v40 = vld [vmem:[%s1175_s1 + $0x248] sm:$0xff]  ;;  %v107_v44 = vld [vmem:[%s1175_s1 + $0x2d0] sm:$0xff]  ;;  %v108_v45 = vld [vmem:[%s1175_s1 + $0x2d8] sm:$0xff] }
  0x24   :  { %714 = vmatprep.subr.bf16.mxu1 %v713_v54  ;;  %256 = vmatmul.mubr.f32.vlgmr.msra.gmra.mrb[0].mxu0 %v156_v27  ;;  %v87_v27 = vld [vmem:[%s1175_s1 + $0x230] sm:$0xff]  ;;  %v122_v43 = vld [vmem:[%s1175_s1 + $0x348] sm:$0xff]  ;;  %v140_v47 = vld [vmem:[%s1175_s1 + $0x3d8] sm:$0xff]  ;;  %v699_v48 = vpack.c.bf16 %v90_v40, %v89_v39  ;;  %v701_v50 = vpack.c.bf16 %v108_v45, %v107_v44 }
  0x25   :  { %684 = vmatpush3.bf16.msra.mxu0 %v683_v62  ;;  %395 = vmatprep.mubr.f32.mxu0 %v181_v8  ;;  %v695_v36 = vpack.c.bf16 %v88_v28, %v87_v27  ;;  %v139_v46 = vld [vmem:[%s1175_s1 + $0x3d0] sm:$0xff]  ;;  %v731_v49 = vpack.c.bf16 %v122_v43, %v121_v41  ;;  %v92_v52 = vld [vmem:[%s1175_s1 + $0x258] sm:$0xff]  ;;  %v109_v56 = vld [vmem:[%s1175_s1 + $0x2e0] sm:$0xff] }
  0x26   :  { %326 = vmatmul.mubr.f32.vlgmr.msra.gmra.mrb[0].mxu1 %v163_v34  ;;  %686 = vmatprep.subr.bf16.mxu0 %v685_v0  ;;  %v137_v34 = vld [vmem:[%s1175_s1 + $0x3c0] sm:$0xff]  ;;  %v91_v51 = vld [vmem:[%s1175_s1 + $0x250] sm:$0xff]  ;;  %v733_v54 = vpack.c.bf16 %v140_v47, %v139_v46  ;;  %v124_v55 = vld [vmem:[%s1175_s1 + $0x358] sm:$0xff] }
  0x27   :  { %716 = vmatpush3.bf16.msra.mxu1 %v715_v63  ;;  %465 = vmatprep.mubr.f32.mxu1 %v182_v11  ;;  %v729_v42 = vpack.c.bf16 %v138_v35, %v137_v34  ;;  %v123_v53 = vld [vmem:[%s1175_s1 + $0x350] sm:$0xff]  ;;  %v110_v57 = vld [vmem:[%s1175_s1 + $0x2e8] sm:$0xff]  ;;  %v141_v59 = vld [vmem:[%s1175_s1 + $0x3e0] sm:$0xff]  ;;  %v703_v62 = vpack.c.bf16 %v92_v52, %v91_v51 }
  0x28   :  { %718 = vmatprep.subr.bf16.mxu1 %v717_v4  ;;  %v142_v60 = vld [vmem:[%s1175_s1 + $0x3e8] sm:$0xff]  ;;  %v735_v63 = vpack.c.bf16 %v124_v55, %v123_v53  ;;  %v705_v0 = vpack.c.bf16 %v110_v57, %v109_v56  ;;  %v93_v1 = vld [vmem:[%s1175_s1 + $0x260] sm:$0xff]  ;;  %v111_v6 = vld [vmem:[%s1175_s1 + $0x2f0] sm:$0xff] }
  0x29   :  { %688 = vmatpush3.bf16.msra.mxu0 %v687_v12  ;;  %v94_v2 = vld [vmem:[%s1175_s1 + $0x268] sm:$0xff]  ;;  %v125_v3 = vld [vmem:[%s1175_s1 + $0x360] sm:$0xff]  ;;  %v737_v4 = vpack.c.bf16 %v142_v60, %v141_v59  ;;  %v112_v7 = vld [vmem:[%s1175_s1 + $0x2f8] sm:$0xff] }
  0x2a   :  { %690 = vmatprep.subr.bf16.mxu0 %v689_v14  ;;  %v126_v5 = vld [vmem:[%s1175_s1 + $0x368] sm:$0xff]  ;;  %v143_v8 = vld [vmem:[%s1175_s1 + $0x3f0] sm:$0xff]  ;;  %v144_v9 = vld [vmem:[%s1175_s1 + $0x3f8] sm:$0xff]  ;;  %v707_v10 = vpack.c.bf16 %v94_v2, %v93_v1  ;;  %v709_v12 = vpack.c.bf16 %v112_v7, %v111_v6 }
  0x2b   :  { %720 = vmatpush3.bf16.msra.mxu1 %v719_v13  ;;  %v739_v11 = vpack.c.bf16 %v126_v5, %v125_v3  ;;  %v95_v13 = vld [vmem:[%s1175_s1 + $0x270] sm:$0xff]  ;;  %v96_v14 = vld [vmem:[%s1175_s1 + $0x278] sm:$0xff]  ;;  %v741_v15 = vpack.c.bf16 %v144_v9, %v143_v8 }
  0x2c   :  { %722 = vmatprep.subr.bf16.mxu1 %v721_v18  ;;  %v127_v16 = vld [vmem:[%s1175_s1 + $0x370] sm:$0xff]  ;;  %v128_v17 = vld [vmem:[%s1175_s1 + $0x378] sm:$0xff]  ;;  %v711_v18 = vpack.c.bf16 %v96_v14, %v95_v13 }
  0x2d   :  { %692 = vmatpush3.bf16.msra.mxu0 %v691_v24  ;;  %v743_v19 = vpack.c.bf16 %v128_v17, %v127_v16 }
  0x2e   :  { %694 = vmatprep.subr.bf16.mxu0 %v693_v26 }
  0x2f   :  { %724 = vmatpush3.bf16.msra.mxu1 %v723_v25 }
  0x30   :  { %726 = vmatprep.subr.bf16.mxu1 %v725_v30 }
  0x31   :  { %696 = vmatpush3.bf16.msra.mxu0 %v695_v36 }
  0x32   :  { %698 = vmatprep.subr.bf16.mxu0 %v697_v38 }
  0x33   :  { %728 = vmatpush3.bf16.msra.mxu1 %v727_v37 }
  0x34   :  { %730 = vmatprep.subr.bf16.mxu1 %v729_v42 }
  0x35   :  { %700 = vmatpush3.bf16.msra.mxu0 %v699_v48 }
  0x36   :  { %702 = vmatprep.subr.bf16.mxu0 %v701_v50 }
  0x37   :  { %732 = vmatpush3.bf16.msra.mxu1 %v731_v49 }
  0x38   :  { %734 = vmatprep.subr.bf16.mxu1 %v733_v54 }
  0x39   :  { %704 = vmatpush3.bf16.msra.mxu0 %v703_v62 }
  0x3a   :  { %706 = vmatprep.subr.bf16.mxu0 %v705_v0 }
  0x3b   :  { %736 = vmatpush3.bf16.msra.mxu1 %v735_v63 }
  0x3c   :  { %738 = vmatprep.subr.bf16.mxu1 %v737_v4 }
  0x3d   :  { %708 = vmatpush3.bf16.msra.mxu0 %v707_v10 }
  0x3e   :  { %710 = vmatprep.subr.bf16.mxu0 %v709_v12 }
  0x3f   :  { %740 = vmatpush3.bf16.msra.mxu1 %v739_v11 }
  0x40   :  { %742 = vmatprep.subr.bf16.mxu1 %v741_v15 }
  0x41   :  { %712 = vmatpush3.bf16.msra.mxu0 %v711_v18 }
  0x43   :  { %744 = vmatpush3.bf16.msra.mxu1 %v743_v19 }
  0x44   :  { %396 = vmatmul.mubr.f32.vlgmr.msra.gmra.mrb[2].mxu0 %v997_v58 }
  0x46   :  { %466 = vmatmul.mubr.f32.vlgmr.msra.gmra.mrb[2].mxu1 %v1005_v61 }
  0xf7   :  { %v509_v20 = vpop.f32.mrb[0].mxu0 }
  0xf8   :  { %v510_v22 = vpop.f32.mrb[1].mxu0 }
  0xf9   :  { %v544_v23 = vpop.f32.mrb[0].mxu1  ;;  %v511_v24 = vadd.f32 %v510_v22, %v509_v20 }
  0xfa   :  { %v545_v25 = vpop.f32.mrb[1].mxu1 }
  0xfb   :  { %v546_v26 = vadd.f32 %v545_v25, %v544_v23  ;;  %v258_v27 = vadd.f32 %v511_v24, %v146_v21 }
  0xfd   :  { %v328_v28 = vadd.f32 %v546_v26, %v258_v27 }
 0x117   :  { %v579_v29 = vpop.f32.mrb[2].mxu0 }
 0x118   :  { %v580_v30 = vpop.f32.mrb[3].mxu0 }
 0x119   :  { %v614_v31 = vpop.f32.mrb[2].mxu1  ;;  %v581_v32 = vadd.f32 %v580_v30, %v579_v29 }
 0x11a   :  { %v615_v33 = vpop.f32.mrb[3].mxu1 }
 0x11b   :  { %v616_v58 = vadd.f32 %v615_v33, %v614_v31  ;;  %v398_v34 = vadd.f32 %v581_v32, %v328_v28 }
 0x11d   :  { %v468_v61 = vadd.f32 %v616_v58, %v398_v34 }
 0x11f   :  { %472 = vst.msk [vmem:[%s1178_s3] sm:$0x3] %vm471_vm0, %v468_v61 }

</bundles_post_ra>
